<compile_context>
chip_gen: v7x
topology: tpu7x:2x2x1
jax: 0.10.0
libtpu: 0.0.40
codegen_flags: <defaults>
</compile_context>

<pallas_src>
import functools

import jax
import jax.numpy as jnp
from jax import lax
from jax.experimental import pallas as pl
from jax.experimental.pallas import tpu as pltpu


def se_kernel(x_ref, w1_ref, b1_ref, w2_ref, b2_ref, o_ref, *, inv_hw):
    # x_ref block: (Bt, C, HW_pad) in the input dtype (f32 or bf16).
    x = x_ref[...]

    # --- squeeze: global average pool (f32 accumulation; padded lanes are 0) ---
    y = jnp.sum(x, axis=-1, dtype=jnp.float32) * inv_hw          # (Bt, C)

    # --- excitation: fc1 + ReLU ---
    # torch Linear(C, Cr).weight is (Cr, C): contract y's C with w1's C.
    z = lax.dot_general(y, w1_ref[...], (((1,), (1,)), ((), ())),
                        preferred_element_type=jnp.float32)      # (Bt, Cr)
    z = jnp.maximum(z + b1_ref[...], 0.0)                        # b1: (1, Cr)

    # --- excitation: fc2 + Sigmoid ---
    # torch Linear(Cr, C).weight is (C, Cr): contract z's Cr with w2's Cr.
    s = lax.dot_general(z, w2_ref[...], (((1,), (1,)), ((), ())),
                        preferred_element_type=jnp.float32)      # (Bt, C)
    s = jax.nn.sigmoid(s + b2_ref[...])                          # b2: (1, C)

    # --- scale: channel-wise gate, multiply in the input dtype ---
    gate = s[:, :, None].astype(x.dtype)                         # (Bt, C, 1)
    o_ref[...] = x * gate


def _choose_block_b(B, C, HW_pad, dtype_bytes, budget_bytes):
    """Largest divisor of B whose double-buffered in+out tiles fit the budget,
    while keeping at least 2 grid steps (megacore on v7x) when B allows."""
    best = 1
    for bt in range(1, B + 1):
        if B % bt:
            continue
        footprint = 4 * bt * C * HW_pad * dtype_bytes  # 2x in + 2x out tiles
        if footprint <= budget_bytes:
            best = bt
    if B >= 2 and best == B:
        for bt in range(B // 2, 0, -1):
            if B % bt == 0:
                best = bt
                break
    return best


def se_layer(x, w1, b1, w2, b2, *,
             tile_budget_bytes=24 << 20,      # safe vs v5e 16MiB default / v7x 64MiB physical
             vmem_limit_bytes=48 << 20):
    """x: (B, C, H, W); w1: (Cr, C); b1: (Cr,); w2: (C, Cr); b2: (C,)."""
    B, C, H, W = x.shape
    HW = H * W
    Cr = w1.shape[0]

    # Lane-dense spatial axis: pad HW up to a multiple of 128, slice back after.
    HW_pad = ((HW + 127) // 128) * 128
    x_flat = x.reshape(B, C, HW)
    if HW_pad != HW:
        x_flat = jnp.pad(x_flat, ((0, 0), (0, 0), (0, HW_pad - HW)))

    dtype_bytes = jnp.dtype(x.dtype).itemsize
    Bt = _choose_block_b(B, C, HW_pad, dtype_bytes, tile_budget_bytes)

    # Biases as lane-oriented rows so they broadcast over (Bt, Cr) / (Bt, C).
    b1_row = b1.reshape(1, Cr)
    b2_row = b2.reshape(1, C)

    kernel = functools.partial(se_kernel, inv_hw=1.0 / HW)

    out = pl.pallas_call(
        kernel,
        out_shape=jax.ShapeDtypeStruct((B, C, HW_pad), x.dtype),
        grid_spec=pltpu.PrefetchScalarGridSpec(
            num_scalar_prefetch=0,
            grid=(B // Bt,),
            in_specs=[
                pl.BlockSpec((Bt, C, HW_pad), lambda b: (b, 0, 0)),  # x tile
                pl.BlockSpec((Cr, C), lambda b: (0, 0)),             # fc1 weight
                pl.BlockSpec((1, Cr), lambda b: (0, 0)),             # fc1 bias
                pl.BlockSpec((C, Cr), lambda b: (0, 0)),             # fc2 weight
                pl.BlockSpec((1, C), lambda b: (0, 0)),              # fc2 bias
            ],
            out_specs=pl.BlockSpec((Bt, C, HW_pad), lambda b: (b, 0, 0)),
        ),
        compiler_params=pltpu.CompilerParams(
            dimension_semantics=("parallel",),
            vmem_limit_bytes=vmem_limit_bytes,
        ),
    )(x_flat, w1, b1_row, w2, b2_row)

    if HW_pad != HW:
        out = out[:, :, :HW]
    return out.reshape(B, C, H, W)


def se_layer_ref(x, w1, b1, w2, b2):
    """Pure-JAX reference mirroring the PyTorch forward."""
    y = x.astype(jnp.float32).mean(axis=(2, 3))            # (B, C)
    z = jnp.maximum(y @ w1.T + b1, 0.0)                    # (B, Cr)
    s = jax.nn.sigmoid(z @ w2.T + b2)                      # (B, C)
    return (x.astype(jnp.float32) * s[:, :, None, None]).astype(x.dtype)


if __name__ == "__main__":
    # Shapes consistent with SELayer(channel=32, reduction=16)
    B, C, H, W = 2, 32, 16, 16
    reduction = 16
    Cr = C // reduction

    key = jax.random.PRNGKey(0)
    kx, k1, k2, k3, k4 = jax.random.split(key, 5)

    x = jax.random.normal(kx, (B, C, H, W), dtype=jnp.float32)

    # Deterministic synthetic parameters (torch Linear layout: (out, in), 1-D bias)
    w1 = 0.1 * jax.random.normal(k1, (Cr, C), dtype=jnp.float32)
    b1 = 0.1 * jax.random.normal(k2, (Cr,), dtype=jnp.float32)
    w2 = 0.1 * jax.random.normal(k3, (C, Cr), dtype=jnp.float32)
    b2 = 0.1 * jax.random.normal(k4, (C,), dtype=jnp.float32)

    out = jax.block_until_ready(se_layer(x, w1, b1, w2, b2))
    ref = se_layer_ref(x, w1, b1, w2, b2)
    assert out.shape == (B, C, H, W)
    assert jnp.allclose(out, ref, atol=1e-5, rtol=1e-5), "mismatch vs reference"

    # Second check: non-128-multiple spatial size exercises the lane-padding path.
    H2, W2 = 14, 14
    x2 = jax.random.normal(kx, (B, C, H2, W2), dtype=jnp.float32)
    out2 = jax.block_until_ready(se_layer(x2, w1, b1, w2, b2))
    ref2 = se_layer_ref(x2, w1, b1, w2, b2)
    assert jnp.allclose(out2, ref2, atol=1e-5, rtol=1e-5), "mismatch vs reference (padded HW)"

    print("KERNEL_OK")
</pallas_src>

<mosaic_0001>
module attributes {stable_mosaic.version = 11 : i64} {
  func.func @se_kernel(%arg0: i32, %arg1: memref<1x32x256xf32, #tpu.memory_space<vmem>>, %arg2: memref<2x32xf32, #tpu.memory_space<vmem>>, %arg3: memref<1x2xf32, #tpu.memory_space<vmem>>, %arg4: memref<32x2xf32, #tpu.memory_space<vmem>>, %arg5: memref<1x32xf32, #tpu.memory_space<vmem>>, %arg6: memref<1x32x256xf32, #tpu.memory_space<vmem>>) attributes {dimension_semantics = [#tpu.dimension_semantics<parallel>], iteration_bounds = array<i64: 2>, scalar_prefetch = 0 : i64, scratch_operands = 0 : i64, tpu.core_type = #tpu.core_type<tc>, window_params = [{transform_indices = @transform_0, window_bounds = array<i64: 1, 32, 256>}, {pipeline_mode = #tpu.pipeline_mode<synchronous>, transform_indices = @transform_1, window_bounds = array<i64: 2, 32>}, {pipeline_mode = #tpu.pipeline_mode<synchronous>, transform_indices = @transform_2, window_bounds = array<i64: 1, 2>}, {pipeline_mode = #tpu.pipeline_mode<synchronous>, transform_indices = @transform_3, window_bounds = array<i64: 32, 2>}, {pipeline_mode = #tpu.pipeline_mode<synchronous>, transform_indices = @transform_4, window_bounds = array<i64: 1, 32>}, {transform_indices = @transform_5, window_bounds = array<i64: 1, 32, 256>}]} {
    %c0 = arith.constant 0 : index
    %c0_0 = arith.constant 0 : index
    %c0_1 = arith.constant 0 : index
    %0 = vector.load %arg1[%c0, %c0_0, %c0_1] : memref<1x32x256xf32, #tpu.memory_space<vmem>>, vector<1x32x256xf32>
    %cst = arith.constant dense<0.000000e+00> : vector<1x32xf32>
    %1 = vector.multi_reduction <add>, %0, %cst [2] : vector<1x32x256xf32> to vector<1x32xf32>
    %cst_2 = arith.constant 3.906250e-03 : f32
    %2 = vector.broadcast %cst_2 : f32 to vector<1x32xf32>
    %3 = arith.mulf %1, %2 : vector<1x32xf32>
    %c0_3 = arith.constant 0 : index
    %c0_4 = arith.constant 0 : index
    %4 = vector.load %arg2[%c0_3, %c0_4] : memref<2x32xf32, #tpu.memory_space<vmem>>, vector<2x32xf32>
    %cst_5 = arith.constant dense<0.000000e+00> : vector<1x2xf32>
    %5 = tpu.matmul %3, %4, %cst_5 {dimension_numbers = #tpu.dot_dimension_numbers<[1], [1], [0], [0], [0, 0, 1, 0], [], []>} : vector<1x32xf32>, vector<2x32xf32>, vector<1x2xf32> -> vector<1x2xf32>
    %c0_6 = arith.constant 0 : index
    %c0_7 = arith.constant 0 : index
    %6 = vector.load %arg3[%c0_6, %c0_7] : memref<1x2xf32, #tpu.memory_space<vmem>>, vector<1x2xf32>
    %7 = arith.addf %5, %6 : vector<1x2xf32>
    %cst_8 = arith.constant 0.000000e+00 : f32
    %8 = vector.broadcast %cst_8 : f32 to vector<1x2xf32>
    %9 = arith.maximumf %7, %8 : vector<1x2xf32>
    %c0_9 = arith.constant 0 : index
    %c0_10 = arith.constant 0 : index
    %10 = vector.load %arg4[%c0_9, %c0_10] : memref<32x2xf32, #tpu.memory_space<vmem>>, vector<32x2xf32>
    %cst_11 = arith.constant dense<0.000000e+00> : vector<1x32xf32>
    %11 = tpu.matmul %9, %10, %cst_11 {dimension_numbers = #tpu.dot_dimension_numbers<[1], [1], [0], [0], [0, 0, 1, 0], [], []>} : vector<1x2xf32>, vector<32x2xf32>, vector<1x32xf32> -> vector<1x32xf32>
    %c0_12 = arith.constant 0 : index
    %c0_13 = arith.constant 0 : index
    %12 = vector.load %arg5[%c0_12, %c0_13] : memref<1x32xf32, #tpu.memory_space<vmem>>, vector<1x32xf32>
    %13 = arith.addf %11, %12 : vector<1x32xf32>
    %14 = arith.negf %13 : vector<1x32xf32>
    %15 = math.exp %14 : vector<1x32xf32>
    %cst_14 = arith.constant 1.000000e+00 : f32
    %16 = vector.broadcast %cst_14 : f32 to vector<1x32xf32>
    %17 = arith.addf %16, %15 : vector<1x32xf32>
    %18 = arith.divf %16, %17 : vector<1x32xf32>
    %19 = vector.shape_cast %18 : vector<1x32xf32> to vector<1x32x1xf32>
    %20 = vector.broadcast %19 : vector<1x32x1xf32> to vector<1x32x256xf32>
    %21 = arith.mulf %0, %20 : vector<1x32x256xf32>
    %c0_15 = arith.constant 0 : index
    %c0_16 = arith.constant 0 : index
    %c0_17 = arith.constant 0 : index
    %22 = vector.load %arg6[%c0_15, %c0_16, %c0_17] : memref<1x32x256xf32, #tpu.memory_space<vmem>>, vector<1x32x256xf32>
    tpu.vector_store %arg6[%c0_15, %c0_16, %c0_17], %21 {strides = array<i32>} : memref<1x32x256xf32, #tpu.memory_space<vmem>>, vector<1x32x256xf32>,
    return
  }
  func.func @transform_0(%arg0: i32) -> (i32, i32, i32) {
    %c0_i32 = arith.constant 0 : i32
    %c0_i32_0 = arith.constant 0 : i32
    %c0_i32_1 = arith.constant 0 : i32
    return %arg0, %c0_i32, %c0_i32_0 : i32, i32, i32
  }
  func.func @transform_1(%arg0: i32) -> (i32, i32) {
    %c0_i32 = arith.constant 0 : i32
    %c0_i32_0 = arith.constant 0 : i32
    %c0_i32_1 = arith.constant 0 : i32
    return %c0_i32, %c0_i32_0 : i32, i32
  }
  func.func @transform_2(%arg0: i32) -> (i32, i32) {
    %c0_i32 = arith.constant 0 : i32
    %c0_i32_0 = arith.constant 0 : i32
    %c0_i32_1 = arith.constant 0 : i32
    return %c0_i32, %c0_i32_0 : i32, i32
  }
  func.func @transform_3(%arg0: i32) -> (i32, i32) {
    %c0_i32 = arith.constant 0 : i32
    %c0_i32_0 = arith.constant 0 : i32
    %c0_i32_1 = arith.constant 0 : i32
    return %c0_i32, %c0_i32_0 : i32, i32
  }
  func.func @transform_4(%arg0: i32) -> (i32, i32) {
    %c0_i32 = arith.constant 0 : i32
    %c0_i32_0 = arith.constant 0 : i32
    %c0_i32_1 = arith.constant 0 : i32
    return %c0_i32, %c0_i32_0 : i32, i32
  }
  func.func @transform_5(%arg0: i32) -> (i32, i32, i32) {
    %c0_i32 = arith.constant 0 : i32
    %c0_i32_0 = arith.constant 0 : i32
    %c0_i32_1 = arith.constant 0 : i32
    return %arg0, %c0_i32, %c0_i32_0 : i32, i32, i32
  }
}

</mosaic_0001>

<bundles_post_ra>
// kernel: tpu_custom_call.1
= control target key start
LH: loop header
LB: loop body
LE: loop exit
PB: predicated region body
PF: predicated region fallthrough
CT: control target
= control target key end

     0   :  { %10 = vsyncpa [#allocation3], 0  ;;  %s1069_s0 = inlined_call_operand.hbm [shape: f32[2,32,256], index: 0, kind: input, shape index: {}]   ;;  %s1070_s1 = inlined_call_operand.vmem [shape: f32[2,32], index: 1, kind: input, shape index: {}]   ;;  %s1071_s2 = inlined_call_operand.vmem [shape: f32[1,2], index: 2, kind: input, shape index: {}]   ;;  %s1072_s3 = inlined_call_operand.vmem [shape: f32[32,2], index: 3, kind: input, shape index: {}]   ;;  %s1073_s4 = inlined_call_operand.vmem [shape: f32[1,32], index: 4, kind: input, shape index: {}]   ;;  %s1074_s5 = inlined_call_operand.hbm [shape: f32[2,32,256], index: 5, kind: output, shape index: {}]  }
   0x1   :  { %12 = vsyncpa [#allocation3 + $0x1], 0 }
   0x2   :  { %13 = vsyncpa [#allocation4], 0 }
   0x3   :  { %15 = vsyncpa [#allocation4 + $0x1], 0  ;;  %s845_s18 = smov 0   ;;  %s847_s19 = smov 0  }
   0x4   :  { %s849_s20 = smov 0   ;;  %s851_s21 = smov 0  }
   0x5 LB: > { %s866_s22 = sadd.s32 4294967295, %s804_s21   ;;  %s596_s23 = sadd.s32 4294967294, %s804_s21   ;;  %s804_s21 = sphi %s851_s21, %s1087_s21   ;;  %s800_s20 = sphi %s849_s20, %s1086_s20   ;;  %s796_s19 = sphi %s847_s19, %s1085_s19   ;;  %s792_s18 = sphi %s845_s18, %s1084_s18  }
   0x6   : > { %s870_s24 = sadd.s32 1, %s804_s21   ;;  %s28_s25 = sadd.s32 1, %s800_s20 }
   0x7   : > { %s25_s26 = ssub.s32 %s804_s21, %s870_s24  ;;  %p35_p0 = scmp.ne.s32.totalorder %s800_s20, %s796_s19 }
   0x8   : > { %p26_p1 = scmp.eq.s32.totalorder %s25_s26, 0  ;;  %p36_p2 = scmp.eq.s32.totalorder %s804_s21, 0 }
   0x9   : > { %p41_p3 = scmp.ne.s32.totalorder %s796_s19, %s792_s18  ;;  %p42_p4 = scmp.eq.s32.totalorder %s866_s22, 0 }
   0xa   : > { %s882_s27 = scalar_select %p26_p1, %s800_s20, %s28_s25  }
   0xb   : > { %p884_p5 = por %p36_p2, %p35_p0  ;;  %p888_p6 = por %p42_p4, %p41_p3 }
   0xc   : > { %p149_p7 = scmp.eq.s32.totalorder %s866_s22, 1  ;;  %p155_p8 = scmp.eq.s32.totalorder %s596_s23, 1 }
   0xd   : > { %p663_p10 = scmp.lt.s32.totalorder %s804_s21, 2  ;;  %s187_s7 = sand.u32 1, %s800_s20  }
   0xe   : > { %p895_p11 = por %p149_p7, %p35_p0  ;;  %p899_p12 = por %p155_p8, %p41_p3 }
   0xf   : > { %s618_s8 = sshll.u32 %s804_s21, 10  ;;  %s599_s9 = sshll.u32 %s187_s7, 6 }
  0x10   : > { %s1078_s30 = scalar_select %p895_p11, 1, 0 }
  0x11   : > { %s1079_s6 = scalar_select %p899_p12, 1, 0 }
  0x12   : > { %s908_s12 = scalar_lea.hbm %s1069_s0, %s618_s8  ;;  %s191_s13 = scalar_lea.vmem [#allocation2], %s599_s9 }
  0x13   : > { %s198_s14 = sshll.u32 %s191_s13, 4  ;;  %p912_p13 = pnand %p663_p10, %p884_p5  ;;  %s916_s14 = int_to_ptr.vmem [resolvable:$true] %s198_s14 }
  0x14   : > { %s918_s16 = scalar_lea.sflag [#allocation3], %s187_s7  ;;  %s708_s17 = scalar_lea.hbm %s908_s12, 1024 }
  0x15   : > { %p709_p0 = scmp.ne.s32.totalorder %s908_s12, %s708_s17  ;;  %p710_p1 = pneg %p912_p13 }
  0x16   : > { %s713_s26 = scalar_lea.hbm %s1069_s0, 2048  ;;  %p714_p4 = scmp.lt.u32.totalorder %s908_s12, %s1069_s0 }
  0x17   : > { %p711_p2 = pnand %p710_p1, %p709_p0  ;;  %p715_p5 = scmp.lt.u32.totalorder %s713_s26, %s708_s17 }
  0x18   : > { %p717_p8 = scmp.lt.u32.totalorder %s708_s17, %s908_s12 }
  0x19   : > { %p712_p3 = pneg %p711_p2  ;;  %p716_p7 = por %p715_p5, %p714_p4 }
  0x1b   : > { %p718_p10 = por %p717_p8, %p716_p7 }
  0x1d   : > { %p719_p9 = pnand %p718_p10, %p712_p3 }
  0x1f   : > { %722 = shalt.err (!%p719_p9)
}
  0x20   : > { %s723_s7 = scalar_lea.vmem %s916_s14, 1024  ;;  %s806_s9 = smov [#allocation2]  }
  0x21   : > { %p724_p0 = scmp.ne.s32.totalorder %s916_s14, %s723_s7  ;;  %s728_s10 = sshll.u32 %s806_s9, 4  ;;  %s729_s10 = int_to_ptr.vmem [resolvable:$false] %s728_s10 }
  0x22   : > { %s730_s11 = scalar_lea.vmem %s729_s10, 2048  ;;  %p731_p11 = scmp.lt.s32.totalorder %s916_s14, %s729_s10 }
  0x23   : > { %p726_p2 = pnand %p724_p0, %p710_p1  ;;  %p732_p4 = scmp.lt.s32.totalorder %s730_s11, %s723_s7 }
  0x25   : > { %p727_p12 = pneg %p726_p2  ;;  %p733_p5 = por %p732_p4, %p731_p11 }
  0x27   : > { %p734_p7 = pnand %p733_p5, %p727_p12 }
  0x29   : > { %737 = shalt.err (!%p734_p7)
}
  0x2a   : > { %s807_s13 = smov 256   ;;  %s808_s17 = smov 16  }
  0x2b   : > { %658 = dma.hbm_to_vmem [thread:$0]  (!%p912_p13), %s908_s12, 1024, %s916_s14, %s918_s16, %s807_s13, %s807_s13, %s808_s17  }
  0x2c   : > { %p602_p9 = scmp.ge.s32.totalorder %s804_s21, 1  ;;  %p206_p1 = scmp.lt.s32.totalorder %s804_s21, 3 }
  0x2e   : > { %p207_p3 = pnand %p602_p9, %p206_p1 }
  0x2f   : > { %s949_s23 = sand.u32 (!%p207_p3), 1, %s796_s19  }
  0x30   : > { %210 = sbr.rel (%p207_p3) target bundleno = 810 (0x32a), region = 40  ;;  %s603_s25 = sshll.u32 (!%p207_p3), %s949_s23, 6 }
  0x31   : > { %s213_s26 = scalar_lea.sflag (!%p207_p3), [#allocation3], %s949_s23  ;;  %s216_s28 = scalar_lea.vmem (!%p207_p3), [#allocation2], %s603_s25 }
  0x37   : > { %783 = dma.done.wait (%p888_p6), %s213_s26, 1024  }
  0x38   : > { %785 = vsyncadd (%p888_p6), %s213_s26, 4294966272  ;;  %v959_v0 = vld [vmem:[%s216_s28] sm:$0xff]  ;;  %v961_v1 = vld [vmem:[%s216_s28 + $0x8] sm:$0xff]  ;;  %v809_v12 = vmov 0.0   ;;  %vm300_vm0 = vcmask 261120   ;;  %vm810_vm1 = vmmov 0   ;;  %v273_v21 = vlaneseq }
  0x39   : > { %v963_v2 = vld [vmem:[%s216_s28 + $0x20] sm:$0xff]  ;;  %v251_v3 = vadd.f32 %v961_v1, %v959_v0  ;;  %v967_v4 = vld [vmem:[%s216_s28 + $0x28] sm:$0xff]  ;;  %v969_v5 = vld [vmem:[%s216_s28 + $0x10] sm:$0xff]  ;;  %627 = vmatprep.subr.mxu0 %v809_v12  ;;  %629 = vmatprep.mubr.msk.f32.mxu0 %vm810_vm1, %v809_v12  ;;  %vm382_vm2 = vcmask 15360   ;;  %v811_v16 = vmov 0.0|0.0   ;;  %vm284_vm4 = vcmask 130112  }
  0x3a   : > { %v971_v6 = vld [vmem:[%s216_s28 + $0x18] sm:$0xff]  ;;  %v257_v7 = vadd.f32 %v967_v4, %v963_v2  ;;  %v975_v8 = vld [vmem:[%s216_s28 + $0x30] sm:$0xff]  ;;  %v267_v13 = vld [vmem:[%s1070_s1] sm:$0x3]  ;;  %640 = vmatprep.mubr.msk.f32.mxu1 %vm810_vm1, %v809_v12  ;;  %643 = vmatprep.subr.bf16.mxu1 %v811_v16  ;;  %v274_v22 = vand.u32 127, %v273_v21  ;;  %v276_v23 = vshrl.u32 %v273_v21, 7 }
  0x3b   : > { %v977_v9 = vld [vmem:[%s216_s28 + $0x38] sm:$0xff]  ;;  %252 = vadd.xlane.f32.xlu0 %v251_v3  ;;  %v254_v10 = vadd.f32 %v971_v6, %v969_v5  ;;  %628 = vmatpush3.xpose.msk.msra.mxu0 %vm300_vm0, %v267_v13  ;;  %v377_v14 = vld [vmem:[%s1072_s3] sm:$0xff]  ;;  %v378_v15 = vld [vmem:[%s1072_s3 + $0x8] sm:$0xff]  ;;  %vm291_vm5 = vcmask 195712   ;;  %vm298_vm6 = vcmask 261312   ;;  %s242_s29 = scalar_lea.vmem [#allocation5], %s603_s25 }
  0x3c   : > { %258 = vadd.xlane.f32.xlu1 %v257_v7  ;;  %v260_v11 = vadd.f32 %v977_v9, %v975_v8  ;;  %v644_v17 = vpack.c.bf16 %v378_v15, %v377_v14  ;;  %vm645_vm3 = vmpackc.low %vm382_vm2, %vm382_vm2  ;;  %v379_v18 = vld [vmem:[%s1072_s3 + $0x10] sm:$0xff]  ;;  %v380_v19 = vld [vmem:[%s1072_s3 + $0x18] sm:$0xff]  ;;  %v279_v24 = vadd.s32 4294967288, %v274_v22  ;;  %v286_v26 = vadd.s32 4294967280, %v274_v22  ;;  %s523_s12 = sshll.u32 %s242_s29, 4  ;;  %s619_s14 = sshll.u32 %s866_s22, 10  ;;  %s1018_s12 = int_to_ptr.vmem [resolvable:$true] %s523_s12 }
  0x3d   : > { %v648_v20 = vpack.c.bf16 %v380_v19, %v379_v18  ;;  %v293_v27 = vadd.s32 4294967272, %v274_v22  ;;  %v277_v29 = vsub.s32 %v274_v22, %v276_v23  ;;  %v268_v46 = vld [vmem:[%s1071_s2] sm:$0x1]  ;;  %v476_v58 = vsub.s32 0, %v276_v23  ;;  %s1023_s16 = scalar_lea.hbm %s1074_s5, %s619_s14  ;;  %s510_s22 = scalar_lea.sflag [#allocation4], %s949_s23 }
  0x3e   : > { %646 = vmatpush3.bf16.xpose.msk.msra.mxu1 %vm645_vm3, %v644_v17  ;;  %v282_v31 = vsub.s32 %v279_v24, %v276_v23  ;;  %v289_v32 = vsub.s32 %v286_v26, %v276_v23  ;;  %v381_v51 = vld [vmem:[%s1073_s4] sm:$0x1]  ;;  %s738_s8 = scalar_lea.vmem %s1018_s12, 1024  ;;  %p1081_p11 = scmp.ne.s32.totalorder %s1078_s30, 0 }
  0x3f   : > { %255 = vadd.xlane.f32.xlu0 %v254_v10  ;;  %647 = vmatprep.subr.bf16.mxu1 %v811_v16  ;;  %v296_v35 = vsub.s32 %v293_v27, %v276_v23  ;;  %p739_p6 = scmp.ne.s32.totalorder %s1018_s12, %s738_s8  ;;  %s812_s7 = smov [#allocation5]  }
  0x40   : > { %261 = vadd.xlane.f32.xlu1 %v260_v11  ;;  %s742_s9 = sshll.u32 %s812_s7, 4  ;;  %s743_s9 = int_to_ptr.vmem [resolvable:$false] %s742_s9 }
  0x41   : > { %p740_p12 = pnand %p739_p6, %p1081_p11  ;;  %s744_s10 = scalar_lea.vmem %s743_s9, 2048 }
  0x42   : > { %p745_p8 = scmp.lt.s32.totalorder %s1018_s12, %s743_s9  ;;  %p746_p10 = scmp.lt.s32.totalorder %s744_s10, %s738_s8 }
  0x43   : > { %p741_p13 = pneg %p740_p12 }
  0x44   : > { %p747_p0 = por %p746_p10, %p745_p8 }
  0x46   : > { %650 = vmatpush3.bf16.xpose.msk.msra.mxu1 %vm645_vm3, %v648_v20  ;;  %p748_p2 = pnand %p747_p0, %p741_p13 }
  0xc8   : > { %v253_v25 = vpop.xlane.xlu0 %252 }
  0xc9   : > { %v259_v28 = vpop.xlane.xlu1 %258  ;;  %v263_v30 = vmul.f32 0.00390625, %v253_v25 }
  0xca   : > { %v265_v33 = vmul.f32 0.00390625, %v259_v28 }
  0xcb   : > { %v278_v39 = vrot.slane %v263_v30, %v277_v29 }
  0xcc   : > { %v256_v34 = vpop.xlane.xlu0 %255  ;;  %v290_v41 = vrot.slane %v265_v33, %v289_v32 }
  0xcd   : > { %v264_v36 = vmul.f32 0.00390625, %v256_v34  ;;  %v262_v37 = vpop.xlane.xlu1 %261 }
  0xce   : > { %v266_v38 = vmul.f32 0.00390625, %v262_v37 }
  0xcf   : > { %v283_v40 = vrot.slane %v264_v36, %v282_v31 }
  0xd0   : > { %v297_v42 = vrot.slane %v266_v38, %v296_v35 }
  0xd1   : > { %v285_v43 = vsel %vm284_vm4, %v283_v40, %v278_v39 }
  0xd2   : > { %v292_v44 = vsel %vm291_vm5, %v290_v41, %v285_v43 }
  0xd3   : > { %v299_v45 = vsel %vm298_vm6, %v297_v42, %v292_v44 }
  0xd4   : > { %630 = vmatmul.mubr.msk.f32.vlgmr.msra.gmra.mrb[0].mxu0 %vm300_vm0, %v299_v45 }
 0x1a7   : > { %v372_v47 = vpop.f32.mrb[0].mxu0 }
 0x1a8   : > { %v373_v48 = vadd.f32 %v372_v47, %v268_v46  ;;  %v631_v49 = vpop.f32.mrb[1].mxu0 }
 0x1aa   : > { %v376_v50 = vmax.f32 %v373_v48, 0.0 }
 0x1ac   : > { %641 = vmatmul.mubr.msk.f32.vlgmr.msra.gmra.mrb[0].mxu1 %vm382_vm2, %v376_v50 }
 0x27f   : > { %v464_v52 = vpop.f32.mrb[0].mxu1 }
 0x280   : > { %v465_v53 = vadd.f32 %v464_v52, %v381_v51  ;;  %v642_v54 = vpop.f32.mrb[1].mxu1 }
 0x282   : > { %v612_v55 = vmul.f32 -1.442695, %v465_v53 }
 0x284   : > { %704 = vpow2.f32 %v612_v55 }
 0x28e   : > { %v705_v56 = vpop.eup %704 }
 0x28f   : > { %v471_v57 = vadd.f32 1.0, %v705_v56 }
 0x291   : > { %706 = vrcp.f32 %v471_v57 }
 0x29b   : > { %v707_v59 = vpop.eup %706 }
 0x29c   : > { %v477_v60 = vrot.slane %v707_v59, %v476_v58 }
 0x29e   : > { %483 = vbcast.lane.b32.xlu1 %v477_v60, 264  ;;  %479 = vbcast.lane.b32.xlu0 %v477_v60, 256 }
 0x2a2   : > { %487 = vbcast.lane.b32.xlu1 %v477_v60, 272 }
 0x2a6   : > { %491 = vbcast.lane.b32.xlu1 %v477_v60, 280 }
 0x310   : > { %v484_v61 = vpop.permute.xlu1 %483  ;;  %v480_v62 = vpop.permute.xlu0 %479 }
 0x311   : > { %v495_v63 = vmul.f32 %v484_v61, %v969_v5  ;;  %v496_v3 = vmul.f32 %v484_v61, %v971_v6  ;;  %v493_v7 = vmul.f32 %v480_v62, %v959_v0  ;;  %v494_v10 = vmul.f32 %v480_v62, %v961_v1 }
 0x313   : > { %503 = vst [vmem:[%s242_s29 + $0x10] sm:$0xff] %v495_v63  ;;  %504 = vst [vmem:[%s242_s29 + $0x18] sm:$0xff] %v496_v3 }
 0x314   : > { %501 = vst [vmem:[%s242_s29] sm:$0xff] %v493_v7  ;;  %502 = vst [vmem:[%s242_s29 + $0x8] sm:$0xff] %v494_v10  ;;  %v488_v11 = vpop.permute.xlu1 %487 }
 0x315   : > { %v497_v12 = vmul.f32 %v488_v11, %v963_v2  ;;  %v498_v5 = vmul.f32 %v488_v11, %v967_v4 }
 0x317   : > { %505 = vst [vmem:[%s242_s29 + $0x20] sm:$0xff] %v497_v12  ;;  %506 = vst [vmem:[%s242_s29 + $0x28] sm:$0xff] %v498_v5 }
 0x318   : > { %v492_v0 = vpop.permute.xlu1 %491 }
 0x319   : > { %v499_v1 = vmul.f32 %v492_v0, %v975_v8  ;;  %v500_v2 = vmul.f32 %v492_v0, %v977_v9 }
 0x31b   : > { %507 = vst [vmem:[%s242_s29 + $0x30] sm:$0xff] %v499_v1  ;;  %508 = vst [vmem:[%s242_s29 + $0x38] sm:$0xff] %v500_v2 }
 0x31c   : > { %751 = shalt.err (!%p748_p2)
}
 0x31d   : > { %s752_s11 = scalar_lea.hbm %s1023_s16, 1024  ;;  %s756_s26 = scalar_lea.hbm %s1074_s5, 2048 }
 0x31e   : > { %p753_p4 = scmp.ne.s32.totalorder %s1023_s16, %s752_s11  ;;  %p757_p9 = scmp.lt.u32.totalorder %s1023_s16, %s1074_s5 }
 0x31f   : > { %p758_p1 = scmp.lt.u32.totalorder %s756_s26, %s752_s11  ;;  %p760_p6 = scmp.lt.u32.totalorder %s752_s11, %s1023_s16 }
 0x320   : > { %p754_p5 = pnand %p753_p4, %p1081_p11 }
 0x321   : > { %p759_p3 = por %p758_p1, %p757_p9 }
 0x322   : > { %p755_p7 = pneg %p754_p5 }
 0x323   : > { %p761_p12 = por %p760_p6, %p759_p3 }
 0x325   : > { %p762_p13 = pnand %p761_p12, %p755_p7 }
 0x327   : > { %765 = shalt.err (!%p762_p13)
}
 0x328   : > { %s813_s14 = smov 256   ;;  %s814_s25 = smov 16  }
 0x329   : > { %653 = dma.vmem_to_hbm [thread:$0]  (%p1081_p11), %s1018_s12, 1024, %s1023_s16, %s510_s22, %s813_s14, %s813_s14, %s814_s25  }
 0x32a PF: > { %s538_s15 = sand.u32 1, %s792_s18   ;;  %p1082_p8 = scmp.ne.s32.totalorder %s1079_s6, 0 }
 0x32b   : > { %p1083_p10 = scmp.ge.s32.totalorder %s804_s21, 2  ;;  %s539_s8 = scalar_lea.sflag [#allocation4], %s538_s15 }
 0x32d   : > { %p660_p0 = pnand %p1083_p10, %p1082_p8 }
 0x32f   : > { %787 = dma.done.wait (!%p660_p0), %s539_s8, 1024  }
 0x330   : > { %789 = vsyncadd (!%p660_p0), %s539_s8, 4294966272  ;;  %p18_p2 = scmp.ge.s32.totalorder %s870_s24, 4   ;;  %s1084_s18 = smov %s796_s19 }
 0x331   : > { %s1085_s19 = smov %s800_s20  ;;  %s1086_s20 = smov %s882_s27 }
 0x332   : > { %s1087_s21 = smov %s870_s24  ;;  %20 = sbr.rel (!%p18_p2) target bundleno = 5 (0x5), region = 85 }
 0x339   :  { %544 = vsyncpa [#allocation3], 1 }
 0x33a   :  { %546 = vsyncpa [#allocation3 + $0x1], 1 }
 0x33b   :  { %547 = vsyncpa [#allocation4], 1 }
 0x33c   :  { %549 = vsyncpa [#allocation4 + $0x1], 1 }

</bundles_post_ra>
